<compile_context>
chip_gen: v7x
topology: tpu7x:2x2x1
jax: 0.10.0
libtpu: 0.0.40
codegen_flags: <defaults>
</compile_context>

<pallas_src>
import functools

import jax
import jax.numpy as jnp
import numpy as np
from jax.experimental import pallas as pl
from jax.experimental.pallas import tpu as pltpu

LANE = 128


def _lstm_seq_kernel(x_ref, h0_ref, c0_ref, wih_ref, whh_ref, b_ref,
                     out_ref, h_ref, c_ref):
    """Grid = (batch_blocks, T). One LSTM cell step per grid point.

    x_ref:   (1, bn, D)   f32 input at timestep t (D = full feature dim)
    h0_ref:  (bn, H)      f32 initial hidden state for this batch block
    c0_ref:  (bn, H)      f32 initial cell state
    wih_ref: (D, 4H)      bf16 W_ih^T (gate order i, f, g, o)
    whh_ref: (H, 4H)      bf16 W_hh^T
    b_ref:   (1, 4H)      f32 b_ih + b_hh
    out_ref: (1, bn, H)   f32 per-step hidden-state output
    h_ref:   (bn, H)      f32 carried hidden state (resident across t)
    c_ref:   (bn, H)      f32 carried cell state  (resident across t)
    """
    t = pl.program_id(1)

    @pl.when(t == 0)
    def _():
        h_ref[...] = h0_ref[...]
        c_ref[...] = c0_ref[...]

    x = x_ref[0].astype(jnp.bfloat16)           # (bn, D)  bf16 for the MXU
    h = h_ref[...]                              # (bn, H)  f32
    c = c_ref[...]                              # (bn, H)  f32

    # Two MXU matmuls, f32 accumulation; weights stay resident in VMEM.
    gates = (jnp.dot(x, wih_ref[...], preferred_element_type=jnp.float32)
             + jnp.dot(h.astype(jnp.bfloat16), whh_ref[...],
                       preferred_element_type=jnp.float32)
             + b_ref[...])                      # (bn, 4H) f32

    H = h.shape[-1]                             # multiple of 128 -> lane-aligned
    i_g = jax.nn.sigmoid(gates[:, 0 * H:1 * H])
    f_g = jax.nn.sigmoid(gates[:, 1 * H:2 * H])
    g_g = jnp.tanh(gates[:, 2 * H:3 * H])
    o_g = jax.nn.sigmoid(gates[:, 3 * H:4 * H])

    c_new = f_g * c + i_g * g_g
    h_new = o_g * jnp.tanh(c_new)

    h_ref[...] = h_new
    c_ref[...] = c_new
    out_ref[0] = h_new.astype(out_ref.dtype)


def prepare_params(params):
    """One-time weight prep, hoisted out of the per-call path.

    Returns:
      w_ih_t: (D, 4H) bf16  = W_ih^T
      w_hh_t: (H, 4H) bf16  = W_hh^T
      bias:   (1, 4H) f32   = b_ih + b_hh
    """
    w_ih = params["w_ih"]                       # (4H, D)
    w_hh = params["w_hh"]                       # (4H, H)
    four_h = w_ih.shape[0]
    h = w_hh.shape[1]
    assert four_h == 4 * h
    w_ih_t = jnp.asarray(w_ih.T, jnp.bfloat16)
    w_hh_t = jnp.asarray(w_hh.T, jnp.bfloat16)
    bias = (params["b_ih"] + params["b_hh"]).reshape(1, four_h).astype(jnp.float32)
    return w_ih_t, w_hh_t, bias


@functools.partial(jax.jit, static_argnames=("block_n",))
def memory_forward(x_seq, hx, cx, w_ih_t, w_hh_t, bias, block_n=None):
    """Pallas equivalent of Memory.forward (LSTM) over a T-step sequence.

    x_seq: (T, N, D)  -- T=1 reproduces the module's inference step
                         (input.unsqueeze(0)).
    hx,cx: (1, N, H)  -- single-layer recurrent state.
    Returns out (T, N, H), (hx_new, cx_new) each (1, N, H).
    """
    T, N, D = x_seq.shape
    assert hx.shape[0] == 1 and cx.shape[0] == 1, "num_layers must be 1"
    H = hx.shape[-1]
    four_h = 4 * H
    assert H % LANE == 0, "hidden_size must be a multiple of 128"
    assert w_ih_t.shape == (D, four_h)
    assert w_hh_t.shape == (H, four_h)

    bn = N if block_n is None else block_n
    nb = N // bn
    assert nb * bn == N
    if nb > 1:
        assert bn % 8 == 0

    out, h_new, c_new = pl.pallas_call(
        _lstm_seq_kernel,
        out_shape=(
            jax.ShapeDtypeStruct((T, N, H), jnp.float32),
            jax.ShapeDtypeStruct((N, H), jnp.float32),
            jax.ShapeDtypeStruct((N, H), jnp.float32),
        ),
        grid=(nb, T),
        in_specs=[
            pl.BlockSpec((1, bn, D), lambda n, t: (t, n, 0)),       # x_t
            pl.BlockSpec((bn, H), lambda n, t: (n, 0)),             # h0
            pl.BlockSpec((bn, H), lambda n, t: (n, 0)),             # c0
            pl.BlockSpec((D, four_h), lambda n, t: (0, 0)),         # W_ih^T (resident)
            pl.BlockSpec((H, four_h), lambda n, t: (0, 0)),         # W_hh^T (resident)
            pl.BlockSpec((1, four_h), lambda n, t: (0, 0)),         # bias (resident)
        ],
        out_specs=(
            pl.BlockSpec((1, bn, H), lambda n, t: (t, n, 0)),       # out_t
            pl.BlockSpec((bn, H), lambda n, t: (n, 0)),             # h final
            pl.BlockSpec((bn, H), lambda n, t: (n, 0)),             # c final
        ),
        # Update the recurrent state in place (mirrors persistent self.hx/self.cx).
        input_output_aliases={1: 1, 2: 2},
        compiler_params=pltpu.CompilerParams(
            dimension_semantics=("parallel", "arbitrary")),
    )(x_seq, hx[0], cx[0], w_ih_t, w_hh_t, bias)

    return out, (h_new[None], c_new[None])


def reset_state(hx, cx, dones):
    """Host-side equivalent of Memory.reset(dones): zero state of done envs."""
    keep = jnp.logical_not(dones)[None, :, None]
    return hx * keep, cx * keep


def lstm_seq_ref(x_seq, h0, c0, params):
    """Pure-JAX f32 reference (PyTorch LSTM semantics, gate order i,f,g,o)."""
    h, c = h0, c0
    H = h0.shape[-1]
    w_ih_t = params["w_ih"].T
    w_hh_t = params["w_hh"].T
    b = params["b_ih"] + params["b_hh"]
    outs = []
    for t in range(x_seq.shape[0]):
        gates = x_seq[t] @ w_ih_t + h @ w_hh_t + b
        i_g = jax.nn.sigmoid(gates[:, 0 * H:1 * H])
        f_g = jax.nn.sigmoid(gates[:, 1 * H:2 * H])
        g_g = jnp.tanh(gates[:, 2 * H:3 * H])
        o_g = jax.nn.sigmoid(gates[:, 3 * H:4 * H])
        c = f_g * c + i_g * g_g
        h = o_g * jnp.tanh(c)
        outs.append(h)
    return jnp.stack(outs, axis=0), h, c


if __name__ == "__main__":
    # Small, module-consistent shapes (hidden_size=256 is the module default).
    T = 8
    num_env = 8
    input_size = 64
    hidden = 256
    num_layers = 1

    key = jax.random.PRNGKey(0)
    k_wih, k_whh, k_bih, k_bhh, k_x, k_h, k_c = jax.random.split(key, 7)

    # PyTorch nn.LSTM init: uniform(-1/sqrt(H), 1/sqrt(H)).
    bound = 1.0 / np.sqrt(hidden)
    params = {
        "w_ih": jax.random.uniform(k_wih, (4 * hidden, input_size), jnp.float32, -bound, bound),
        "w_hh": jax.random.uniform(k_whh, (4 * hidden, hidden), jnp.float32, -bound, bound),
        "b_ih": jax.random.uniform(k_bih, (4 * hidden,), jnp.float32, -bound, bound),
        "b_hh": jax.random.uniform(k_bhh, (4 * hidden,), jnp.float32, -bound, bound),
    }
    w_ih_t, w_hh_t, bias = prepare_params(params)

    # Module initializes hx/cx to zeros; use nonzero state to exercise recurrence.
    x_seq = jax.random.normal(k_x, (T, num_env, input_size), jnp.float32)
    hx = jax.random.normal(k_h, (num_layers, num_env, hidden), jnp.float32) * 0.1
    cx = jax.random.normal(k_c, (num_layers, num_env, hidden), jnp.float32) * 0.1

    # Multi-step (T timesteps fused into one pallas_call).
    out, (hx_new, cx_new) = memory_forward(x_seq, hx, cx, w_ih_t, w_hh_t, bias)
    jax.block_until_ready((out, hx_new, cx_new))

    out_ref, h_ref, c_ref = lstm_seq_ref(x_seq, hx[0], cx[0], params)
    assert out.shape == (T, num_env, hidden)
    assert hx_new.shape == (num_layers, num_env, hidden)
    assert cx_new.shape == (num_layers, num_env, hidden)
    tol = dict(rtol=2e-2, atol=2e-2)  # bf16 matmul inputs, f32 accumulation/state
    np.testing.assert_allclose(np.asarray(out), np.asarray(out_ref), **tol)
    np.testing.assert_allclose(np.asarray(hx_new[0]), np.asarray(h_ref), **tol)
    np.testing.assert_allclose(np.asarray(cx_new[0]), np.asarray(c_ref), **tol)

    # Single-step path == Memory.forward(input) with masks=None (input.unsqueeze(0)).
    x0 = x_seq[0]
    out1, (hx1, cx1) = memory_forward(x0[None], hx, cx, w_ih_t, w_hh_t, bias)
    jax.block_until_ready((out1, hx1, cx1))
    out1_ref, h1_ref, c1_ref = lstm_seq_ref(x0[None], hx[0], cx[0], params)
    assert out1.shape == (1, num_env, hidden)
    np.testing.assert_allclose(np.asarray(out1), np.asarray(out1_ref), **tol)
    np.testing.assert_allclose(np.asarray(hx1[0]), np.asarray(h1_ref), **tol)
    np.testing.assert_allclose(np.asarray(cx1[0]), np.asarray(c1_ref), **tol)

    # reset(dones) equivalent: zero the state of "done" environments.
    dones = jnp.array([True, False] * (num_env // 2))
    hx_r, cx_r = reset_state(hx_new, cx_new, dones)
    jax.block_until_ready((hx_r, cx_r))
    assert float(jnp.abs(hx_r[0, dones]).max()) == 0.0

    print("KERNEL_OK")
</pallas_src>

<mosaic_0001>
module attributes {stable_mosaic.version = 11 : i64} {
  func.func @_lstm_seq_kernel(%arg0: i32, %arg1: i32, %arg2: memref<1x8x64xf32, #tpu.memory_space<vmem>>, %arg3: memref<8x256xf32, #tpu.memory_space<vmem>>, %arg4: memref<8x256xf32, #tpu.memory_space<vmem>>, %arg5: memref<64x1024xbf16, #tpu.memory_space<vmem>>, %arg6: memref<256x1024xbf16, #tpu.memory_space<vmem>>, %arg7: memref<1x1024xf32, #tpu.memory_space<vmem>>, %arg8: memref<1x8x256xf32, #tpu.memory_space<vmem>>, %arg9: memref<8x256xf32, #tpu.memory_space<vmem>>, %arg10: memref<8x256xf32, #tpu.memory_space<vmem>>) attributes {dimension_semantics = [#tpu.dimension_semantics<parallel>, #tpu.dimension_semantics<arbitrary>], iteration_bounds = array<i64: 1, 8>, scalar_prefetch = 0 : i64, scratch_operands = 0 : i64, tpu.core_type = #tpu.core_type<tc>, window_params = [{transform_indices = @transform_0, window_bounds = array<i64: 1, 8, 64>}, {transform_indices = @transform_1, window_bounds = array<i64: 8, 256>}, {transform_indices = @transform_2, window_bounds = array<i64: 8, 256>}, {pipeline_mode = #tpu.pipeline_mode<synchronous>, transform_indices = @transform_3, window_bounds = array<i64: 64, 1024>}, {pipeline_mode = #tpu.pipeline_mode<synchronous>, transform_indices = @transform_4, window_bounds = array<i64: 256, 1024>}, {pipeline_mode = #tpu.pipeline_mode<synchronous>, transform_indices = @transform_5, window_bounds = array<i64: 1, 1024>}, {transform_indices = @transform_6, window_bounds = array<i64: 1, 8, 256>}, {transform_indices = @transform_7, window_bounds = array<i64: 8, 256>}, {transform_indices = @transform_8, window_bounds = array<i64: 8, 256>}]} {
    %c0_i32 = arith.constant 0 : i32
    %0 = arith.cmpi eq, %arg1, %c0_i32 : i32
    %1 = arith.extui %0 : i1 to i32
    %c0_i32_0 = arith.constant 0 : i32
    %2 = arith.cmpi ne, %1, %c0_i32_0 : i32
    scf.if %2 {
      %c0_24 = arith.constant 0 : index
      %c0_25 = arith.constant 0 : index
      %47 = vector.load %arg3[%c0_24, %c0_25] : memref<8x256xf32, #tpu.memory_space<vmem>>, vector<8x256xf32>
      %c0_26 = arith.constant 0 : index
      %c0_27 = arith.constant 0 : index
      %48 = vector.load %arg9[%c0_26, %c0_27] : memref<8x256xf32, #tpu.memory_space<vmem>>, vector<8x256xf32>
      tpu.vector_store %arg9[%c0_26, %c0_27], %47 {strides = array<i32>} : memref<8x256xf32, #tpu.memory_space<vmem>>, vector<8x256xf32>,
      %c0_28 = arith.constant 0 : index
      %c0_29 = arith.constant 0 : index
      %49 = vector.load %arg4[%c0_28, %c0_29] : memref<8x256xf32, #tpu.memory_space<vmem>>, vector<8x256xf32>
      %c0_30 = arith.constant 0 : index
      %c0_31 = arith.constant 0 : index
      %50 = vector.load %arg10[%c0_30, %c0_31] : memref<8x256xf32, #tpu.memory_space<vmem>>, vector<8x256xf32>
      tpu.vector_store %arg10[%c0_30, %c0_31], %49 {strides = array<i32>} : memref<8x256xf32, #tpu.memory_space<vmem>>, vector<8x256xf32>,
    } else {
    }
    %c0 = arith.constant 0 : index
    %c0_1 = arith.constant 0 : index
    %c0_2 = arith.constant 0 : index
    %3 = vector.load %arg2[%c0, %c0_1, %c0_2] : memref<1x8x64xf32, #tpu.memory_space<vmem>>, vector<1x8x64xf32>
    %4 = vector.shape_cast %3 : vector<1x8x64xf32> to vector<8x64xf32>
    %5 = arith.truncf %4 : vector<8x64xf32> to vector<8x64xbf16>
    %c0_3 = arith.constant 0 : index
    %c0_4 = arith.constant 0 : index
    %6 = vector.load %arg9[%c0_3, %c0_4] : memref<8x256xf32, #tpu.memory_space<vmem>>, vector<8x256xf32>
    %c0_5 = arith.constant 0 : index
    %c0_6 = arith.constant 0 : index
    %7 = vector.load %arg10[%c0_5, %c0_6] : memref<8x256xf32, #tpu.memory_space<vmem>>, vector<8x256xf32>
    %c0_7 = arith.constant 0 : index
    %c0_8 = arith.constant 0 : index
    %8 = vector.load %arg5[%c0_7, %c0_8] : memref<64x1024xbf16, #tpu.memory_space<vmem>>, vector<64x1024xbf16>
    %cst = arith.constant dense<0.000000e+00> : vector<8x1024xf32>
    %9 = tpu.matmul %5, %8, %cst {dimension_numbers = #tpu.dot_dimension_numbers<[1], [0], [0], [1], [0, 0, 1, 1], [], []>} : vector<8x64xbf16>, vector<64x1024xbf16>, vector<8x1024xf32> -> vector<8x1024xf32>
    %10 = arith.truncf %6 : vector<8x256xf32> to vector<8x256xbf16>
    %c0_9 = arith.constant 0 : index
    %c0_10 = arith.constant 0 : index
    %11 = vector.load %arg6[%c0_9, %c0_10] : memref<256x1024xbf16, #tpu.memory_space<vmem>>, vector<256x1024xbf16>
    %cst_11 = arith.constant dense<0.000000e+00> : vector<8x1024xf32>
    %12 = tpu.matmul %10, %11, %cst_11 {dimension_numbers = #tpu.dot_dimension_numbers<[1], [0], [0], [1], [0, 0, 1, 1], [], []>} : vector<8x256xbf16>, vector<256x1024xbf16>, vector<8x1024xf32> -> vector<8x1024xf32>
    %13 = arith.addf %9, %12 : vector<8x1024xf32>
    %c0_12 = arith.constant 0 : index
    %c0_13 = arith.constant 0 : index
    %14 = vector.load %arg7[%c0_12, %c0_13] : memref<1x1024xf32, #tpu.memory_space<vmem>>, vector<1x1024xf32>
    %15 = vector.broadcast %14 : vector<1x1024xf32> to vector<8x1024xf32>
    %16 = arith.addf %13, %15 : vector<8x1024xf32>
    %17 = vector.extract_strided_slice %16 {offsets = [0, 0], sizes = [8, 256], strides = [1, 1]} : vector<8x1024xf32> to vector<8x256xf32>
    %18 = arith.negf %17 : vector<8x256xf32>
    %19 = math.exp %18 : vector<8x256xf32>
    %cst_14 = arith.constant 1.000000e+00 : f32
    %20 = vector.broadcast %cst_14 : f32 to vector<8x256xf32>
    %21 = arith.addf %20, %19 : vector<8x256xf32>
    %22 = arith.divf %20, %21 : vector<8x256xf32>
    %23 = vector.extract_strided_slice %16 {offsets = [0, 256], sizes = [8, 256], strides = [1, 1]} : vector<8x1024xf32> to vector<8x256xf32>
    %24 = arith.negf %23 : vector<8x256xf32>
    %25 = math.exp %24 : vector<8x256xf32>
    %cst_15 = arith.constant 1.000000e+00 : f32
    %26 = vector.broadcast %cst_15 : f32 to vector<8x256xf32>
    %27 = arith.addf %26, %25 : vector<8x256xf32>
    %28 = arith.divf %26, %27 : vector<8x256xf32>
    %29 = vector.extract_strided_slice %16 {offsets = [0, 512], sizes = [8, 256], strides = [1, 1]} : vector<8x1024xf32> to vector<8x256xf32>
    %30 = math.tanh %29 : vector<8x256xf32>
    %31 = vector.extract_strided_slice %16 {offsets = [0, 768], sizes = [8, 256], strides = [1, 1]} : vector<8x1024xf32> to vector<8x256xf32>
    %32 = arith.negf %31 : vector<8x256xf32>
    %33 = math.exp %32 : vector<8x256xf32>
    %cst_16 = arith.constant 1.000000e+00 : f32
    %34 = vector.broadcast %cst_16 : f32 to vector<8x256xf32>
    %35 = arith.addf %34, %33 : vector<8x256xf32>
    %36 = arith.divf %34, %35 : vector<8x256xf32>
    %37 = arith.mulf %28, %7 : vector<8x256xf32>
    %38 = arith.mulf %22, %30 : vector<8x256xf32>
    %39 = arith.addf %37, %38 : vector<8x256xf32>
    %40 = math.tanh %39 : vector<8x256xf32>
    %41 = arith.mulf %36, %40 : vector<8x256xf32>
    %c0_17 = arith.constant 0 : index
    %c0_18 = arith.constant 0 : index
    %42 = vector.load %arg9[%c0_17, %c0_18] : memref<8x256xf32, #tpu.memory_space<vmem>>, vector<8x256xf32>
    tpu.vector_store %arg9[%c0_17, %c0_18], %41 {strides = array<i32>} : memref<8x256xf32, #tpu.memory_space<vmem>>, vector<8x256xf32>,
    %c0_19 = arith.constant 0 : index
    %c0_20 = arith.constant 0 : index
    %43 = vector.load %arg10[%c0_19, %c0_20] : memref<8x256xf32, #tpu.memory_space<vmem>>, vector<8x256xf32>
    tpu.vector_store %arg10[%c0_19, %c0_20], %39 {strides = array<i32>} : memref<8x256xf32, #tpu.memory_space<vmem>>, vector<8x256xf32>,
    %c0_21 = arith.constant 0 : index
    %c0_22 = arith.constant 0 : index
    %c0_23 = arith.constant 0 : index
    %44 = vector.load %arg8[%c0_21, %c0_22, %c0_23] : memref<1x8x256xf32, #tpu.memory_space<vmem>>, vector<1x8x256xf32>
    %45 = vector.shape_cast %44 : vector<1x8x256xf32> to vector<8x256xf32>
    %46 = vector.shape_cast %41 : vector<8x256xf32> to vector<1x8x256xf32>
    tpu.vector_store %arg8[%c0_21, %c0_22, %c0_23], %46 {strides = array<i32>} : memref<1x8x256xf32, #tpu.memory_space<vmem>>, vector<1x8x256xf32>,
    return
  }
  func.func @transform_0(%arg0: i32, %arg1: i32) -> (i32, i32, i32) {
    %c0_i32 = arith.constant 0 : i32
    %c0_i32_0 = arith.constant 0 : i32
    return %arg1, %arg0, %c0_i32 : i32, i32, i32
  }
  func.func @transform_1(%arg0: i32, %arg1: i32) -> (i32, i32) {
    %c0_i32 = arith.constant 0 : i32
    %c0_i32_0 = arith.constant 0 : i32
    return %arg0, %c0_i32 : i32, i32
  }
  func.func @transform_2(%arg0: i32, %arg1: i32) -> (i32, i32) {
    %c0_i32 = arith.constant 0 : i32
    %c0_i32_0 = arith.constant 0 : i32
    return %arg0, %c0_i32 : i32, i32
  }
  func.func @transform_3(%arg0: i32, %arg1: i32) -> (i32, i32) {
    %c0_i32 = arith.constant 0 : i32
    %c0_i32_0 = arith.constant 0 : i32
    %c0_i32_1 = arith.constant 0 : i32
    return %c0_i32, %c0_i32_0 : i32, i32
  }
  func.func @transform_4(%arg0: i32, %arg1: i32) -> (i32, i32) {
    %c0_i32 = arith.constant 0 : i32
    %c0_i32_0 = arith.constant 0 : i32
    %c0_i32_1 = arith.constant 0 : i32
    return %c0_i32, %c0_i32_0 : i32, i32
  }
  func.func @transform_5(%arg0: i32, %arg1: i32) -> (i32, i32) {
    %c0_i32 = arith.constant 0 : i32
    %c0_i32_0 = arith.constant 0 : i32
    %c0_i32_1 = arith.constant 0 : i32
    return %c0_i32, %c0_i32_0 : i32, i32
  }
  func.func @transform_6(%arg0: i32, %arg1: i32) -> (i32, i32, i32) {
    %c0_i32 = arith.constant 0 : i32
    %c0_i32_0 = arith.constant 0 : i32
    return %arg1, %arg0, %c0_i32 : i32, i32, i32
  }
  func.func @transform_7(%arg0: i32, %arg1: i32) -> (i32, i32) {
    %c0_i32 = arith.constant 0 : i32
    %c0_i32_0 = arith.constant 0 : i32
    return %arg0, %c0_i32 : i32, i32
  }
  func.func @transform_8(%arg0: i32, %arg1: i32) -> (i32, i32) {
    %c0_i32 = arith.constant 0 : i32
    %c0_i32_0 = arith.constant 0 : i32
    return %arg0, %c0_i32 : i32, i32
  }
}

</mosaic_0001>

<bundles_post_ra>
// kernel: memory_forward.1
= control target key start
LH: loop header
LB: loop body
LE: loop exit
PB: predicated region body
PF: predicated region fallthrough
CT: control target
= control target key end

     0   :  { %s2913_s0 = inlined_call_operand.hbm [shape: f32[8,8,64], index: 0, kind: input, shape index: {}]   ;;  %s2914_s1 = inlined_call_operand.vmem [shape: f32[8,256], index: 1, kind: input, shape index: {}, may-alias: {1,7}]   ;;  %s2915_s2 = inlined_call_operand.vmem [shape: f32[8,256], index: 2, kind: input, shape index: {}, may-alias: {2,8}]   ;;  %s2916_s3 = inlined_call_operand.hbm [shape: bf16[64,1024], index: 3, kind: input, shape index: {}]   ;;  %s2917_s4 = inlined_call_operand.hbm [shape: bf16[256,1024], index: 4, kind: input, shape index: {}]   ;;  %s2918_s5 = inlined_call_operand.vmem [shape: f32[1,1024], index: 5, kind: input, shape index: {}]   ;;  %s2919_s6 = inlined_call_operand.hbm [shape: f32[8,8,256], index: 6, kind: output, shape index: {0}]   ;;  %s2920_s7 = inlined_call_operand.vmem [shape: f32[8,256], index: 7, kind: output, shape index: {1}, may-alias: {1,7}]   ;;  %s2921_s8 = inlined_call_operand.vmem [shape: f32[8,256], index: 8, kind: output, shape index: {2}, may-alias: {2,8}]  }
   0x1   :  { %2929 = sst [smem:[#allocation14_spill]] %s2919_s6 }
   0x2   :  { %14 = vsyncpa [#allocation3], 0 }
   0x3   :  { %16 = vsyncpa [#allocation3 + $0x1], 0 }
   0x4   :  { %17 = vsyncpa [#allocation6], 0 }
   0x5   :  { %18 = vsyncpa [#allocation4], 0 }
   0x6   :  { %20 = vsyncpa [#allocation4 + $0x1], 0  ;;  %s2595_s27 = smov 0   ;;  %s2597_s28 = smov 0  }
   0x7   :  { %s2599_s29 = smov 0   ;;  %s2601_s30 = smov 0  }
   0x8   :  { %s2603_s9 = smov 0   ;;  %s2605_s10 = smov 0  }
   0x9 LB: > { %2930 = sst [smem:[#allocation12_spill]] %s2521_s27  ;;  %s2057_s11 = sadd.s32 4294967295, %s2541_s10   ;;  %s2541_s10 = sphi %s2605_s10, %s26_s10   ;;  %s2537_s9 = sphi %s2603_s9, %s2952_s9   ;;  %s2533_s30 = sphi %s2601_s30, %s2951_s30   ;;  %s2529_s29 = sphi %s2599_s29, %s2950_s29   ;;  %s2525_s28 = sphi %s2597_s28, %s2949_s28   ;;  %s2521_s27 = sphi %s2595_s27, %s2948_s27  }
   0xa   : > { %s2058_s12 = sadd.s32 4294967294, %s2541_s10   ;;  %p60_p0 = scmp.ne.s32.totalorder %s2525_s28, %s2521_s27 }
   0xb   : > { %p2629_p1 = scmp.eq.s32.totalorder %s2057_s11, 0  ;;  %p2633_p2 = scmp.eq.s32.totalorder %s2057_s11, 7 }
   0xc   : > { %p207_p3 = scmp.eq.s32.totalorder %s2058_s12, 7  ;;  %p2059_p5 = scmp.ge.s32.totalorder %s2541_s10, 1 }
   0xd   : > { %s2931_s13 = scalar_select %p2629_p1, 1, 0 }
   0xe   : > { %s2932_s14 = scalar_select %p2633_p2, 1, 0 }
   0xf   : > { %p2639_p4 = por %p2629_p1, %p60_p0  ;;  %p2644_p6 = por %p207_p3, %p60_p0 }
  0x10   : > { %p266_p7 = scmp.lt.s32.totalorder %s2541_s10, 9  ;;  %s2543_s18 = smov [#allocation5]  }
  0x11   : > { %s2933_s15 = scalar_select %p2639_p4, 1, 0 }
  0x12   : > { %s2934_s16 = scalar_select %p2644_p6, 1, 0 }
  0x13   : > { %p2649_p8 = pnand %p2059_p5, %p266_p7  ;;  %s294_s19 = sshll.u32 %s2543_s18, 4  ;;  %s295_s19 = int_to_ptr.vmem [resolvable:$true] %s294_s19 }
  0x14   : > { %2935 = sst [smem:[#allocation13_spill]] %s2934_s16  ;;  %s2544_s21 = smov [#allocation7]  }
  0x15   : > { %s2936_s17 = scalar_select %p2649_p8, 1, 0 }
  0x16   : > { %p2263_p9 = pneg %p2649_p8  ;;  %s307_s22 = sshll.u32 %s2544_s21, 4  ;;  %s2661_s22 = int_to_ptr.vmem [resolvable:$true] %s307_s22 }
  0x17   : > { %s2369_s25 = scalar_lea.hbm %s2916_s3, 4096 }
  0x18   : > { %p2657_p10 = pnand %p2263_p9, %p2629_p1  ;;  %p2370_p11 = scmp.ne.s32.totalorder %s2916_s3, %s2369_s25 }
  0x19   : > { %p2376_p3 = scmp.lt.u32.totalorder %s2369_s25, %s2916_s3 }
  0x1a   : > { %p2371_p12 = pneg %p2657_p10 }
  0x1c   : > { %p2372_p13 = pnand %p2371_p12, %p2370_p11 }
  0x1e   : > { %p2373_p0 = pneg %p2372_p13 }
  0x20   : > { %p2378_p5 = pnand %p2376_p3, %p2373_p0 }
  0x22   : > { %2381 = shalt.err (!%p2378_p5)
}
  0x23   : > { %s2382_s21 = scalar_lea.vmem %s295_s19, 4096  ;;  %p2390_p1 = scmp.lt.s32.totalorder %s295_s19, %s295_s19 }
  0x24   : > { %p2383_p7 = scmp.ne.s32.totalorder %s295_s19, %s2382_s21  ;;  %p2391_p4 = scmp.lt.s32.totalorder %s2382_s21, %s2382_s21 }
  0x26   : > { %p2385_p9 = pnand %p2383_p7, %p2371_p12  ;;  %p2392_p8 = por %p2391_p4, %p2390_p1 }
  0x28   : > { %p2386_p6 = pneg %p2385_p9 }
  0x2a   : > { %p2393_p2 = pnand %p2392_p8, %p2386_p6 }
  0x2c   : > { %2396 = shalt.err (!%p2393_p2)
}
  0x2d   : > { %s2545_s23 = smov 512   ;;  %s2546_s24 = smov 32  }
  0x2e   : > { %2266 = dma.hbm_to_vmem [thread:$0]  (!%p2657_p10), %s2916_s3, 4096, %s295_s19, [#allocation6], %s2545_s23, %s2545_s23, %s2546_s24  }
  0x2f   : > { %s2397_s18 = scalar_lea.hbm %s2917_s4, 16384 }
  0x30   : > { %p2398_p11 = scmp.ne.s32.totalorder %s2917_s4, %s2397_s18  ;;  %p2404_p4 = scmp.lt.u32.totalorder %s2397_s18, %s2917_s4 }
  0x32   : > { %p2400_p1 = pnand %p2398_p11, %p2371_p12 }
  0x34   : > { %p2401_p2 = pneg %p2400_p1 }
  0x36   : > { %p2406_p6 = pnand %p2404_p4, %p2401_p2 }
  0x38   : > { %2409 = shalt.err (!%p2406_p6)
}
  0x39   : > { %s2410_s19 = scalar_lea.vmem %s2661_s22, 16384  ;;  %p2418_p3 = scmp.lt.s32.totalorder %s2661_s22, %s2661_s22 }
  0x3a   : > { %p2411_p8 = scmp.ne.s32.totalorder %s2661_s22, %s2410_s19  ;;  %p2419_p5 = scmp.lt.s32.totalorder %s2410_s19, %s2410_s19 }
  0x3c   : > { %p2413_p13 = pnand %p2411_p8, %p2371_p12  ;;  %p2420_p7 = por %p2419_p5, %p2418_p3 }
  0x3e   : > { %p2414_p0 = pneg %p2413_p13 }
  0x40   : > { %p2421_p9 = pnand %p2420_p7, %p2414_p0 }
  0x42   : > { %2424 = shalt.err (!%p2421_p9)
}
  0x43   : > { %2269 = dma.hbm_to_vmem [thread:$0]  (!%p2657_p10), %s2917_s4, 16384, %s2661_s22, [#allocation6], %s2545_s23, %s2545_s23, %s2546_s24  }
  0x44   : > { %s35_s16 = sadd.s32 1, %s2537_s9  ;;  %s47_s25 = sadd.s32 1, %s2529_s29 }
  0x45   : > { %p36_p12 = scmp.ge.s32.totalorder %s35_s16, 8  ;;  %p54_p11 = scmp.ne.s32.totalorder %s2529_s29, %s2525_s28 }
  0x46   : > { %p55_p1 = scmp.eq.s32.totalorder %s2541_s10, 0  ;;  %p2280_p2 = scmp.lt.s32.totalorder %s2541_s10, 8 }
  0x47   : > { %s2954_s16 = smov (%p36_p12, %s35_s16), 0  ;;  %p2938_p6 = scmp.ne.s32.totalorder %s2932_s14, 0 }
  0x48   : > { %p56_p4 = por %p55_p1, %p54_p11  ;;  %s42_s26 = ssub.s32 %s2537_s9, %s2954_s16 }
  0x49   : > { %p2720_p8 = por %p2938_p6, %p54_p11  ;;  %s324_s11 = sand.u32 1, %s2529_s29  }
  0x4a   : > { %p45_p13 = scmp.eq.s32.totalorder %s42_s26, 0  ;;  %s2065_s22 = sshll.u32 %s324_s11, 3 }
  0x4b   : > { %s2066_s23 = sshll.u32 %s2537_s9, 7  ;;  %s328_s14 = scalar_lea.vmem [#allocation2], %s2065_s22 }
  0x4c   : > { %s2729_s24 = scalar_select %p45_p13, %s2529_s29, %s47_s25  }
  0x4d   : > { %s2734_s21 = scalar_lea.hbm %s2913_s0, %s2066_s23  ;;  %s336_s19 = sshll.u32 %s328_s14, 4  ;;  %s2742_s19 = int_to_ptr.vmem [resolvable:$true] %s336_s19 }
  0x4e   : > { %p2738_p10 = pnand %p2280_p2, %p56_p4  ;;  %s325_s27 = scalar_lea.sflag [#allocation3], %s324_s11 }
  0x4f   : > { %s2425_s25 = scalar_lea.hbm %s2734_s21, 128  ;;  %s2430_s23 = scalar_lea.hbm %s2913_s0, 1024 }
  0x50   : > { %p2426_p0 = scmp.ne.s32.totalorder %s2734_s21, %s2425_s25  ;;  %p2427_p3 = pneg %p2738_p10 }
  0x51   : > { %p2431_p9 = scmp.lt.u32.totalorder %s2734_s21, %s2913_s0  ;;  %p2432_p12 = scmp.lt.u32.totalorder %s2430_s23, %s2425_s25 }
  0x52   : > { %p2428_p5 = pnand %p2427_p3, %p2426_p0  ;;  %p2434_p1 = scmp.lt.u32.totalorder %s2425_s25, %s2734_s21 }
  0x53   : > { %p2433_p11 = por %p2432_p12, %p2431_p9 }
  0x54   : > { %p2429_p7 = pneg %p2428_p5 }
  0x55   : > { %p2435_p2 = por %p2434_p1, %p2433_p11 }
  0x57   : > { %p2436_p4 = pnand %p2435_p2, %p2429_p7 }
  0x59   : > { %2439 = shalt.err (!%p2436_p4)
}
  0x5a   : > { %s2440_s11 = scalar_lea.vmem %s2742_s19, 128  ;;  %s2547_s14 = smov [#allocation2]  }
  0x5b   : > { %p2441_p6 = scmp.ne.s32.totalorder %s2742_s19, %s2440_s11  ;;  %s2445_s26 = sshll.u32 %s2547_s14, 4  ;;  %s2446_s26 = int_to_ptr.vmem [resolvable:$false] %s2445_s26 }
  0x5c   : > { %s2447_s22 = scalar_lea.vmem %s2446_s26, 256  ;;  %p2448_p5 = scmp.lt.s32.totalorder %s2742_s19, %s2446_s26 }
  0x5d   : > { %p2443_p13 = pnand %p2441_p6, %p2427_p3  ;;  %p2449_p9 = scmp.lt.s32.totalorder %s2447_s22, %s2440_s11 }
  0x5f   : > { %p2444_p0 = pneg %p2443_p13  ;;  %p2450_p12 = por %p2449_p9, %p2448_p5 }
  0x61   : > { %p2451_p11 = pnand %p2450_p12, %p2444_p0 }
  0x63   : > { %2454 = shalt.err (!%p2451_p11)
}
  0x64   : > { %2273 = dma.hbm_to_vmem [thread:$0]  (!%p2738_p10), %s2734_s21, 128, %s2742_s19, %s325_s27  }
  0x65   : > { %p2941_p7 = scmp.ne.s32.totalorder %s2936_s17, 0 }
  0x66   : > { %s2772_s25 = sand.u32 (!%p2941_p7), 1, %s2525_s28   ;;  %p2942_p3 = scmp.ne.s32.totalorder (!%p2941_p7), %s2933_s15, 0 }
  0x67   : > { %345 = sbr.rel (%p2941_p7) target bundleno = 554 (0x22a), region = 44  ;;  %s2068_s23 = sshll.u32 (!%p2941_p7), %s2772_s25, 3 }
  0x68   : > { %s348_s12 = scalar_lea.sflag (!%p2941_p7), [#allocation3], %s2772_s25  ;;  %s2776_s18 = scalar_lea.vmem (!%p2941_p7), [#allocation2], %s2068_s23 }
  0x6e   : > { %2508 = dma.done.wait (%p2942_p3), %s348_s12, 128  }
  0x6f   : > { %2510 = vsyncadd (%p2942_p3), %s348_s12, 4294967168  ;;  %p2943_p10 = scmp.ne.s32.totalorder %s2931_s13, 0 }
  0x71   : > { %2512 = dma.done.wait (%p2943_p10), [#allocation6], 20480  }
  0x72   : > { %2514 = vsyncadd (%p2943_p10), [#allocation6], 4294946816  ;;  %s2071_s17 = sshll.u32 %s2772_s25, 4  ;;  %p2072_p1 = scmp.ne.s32.totalorder %s2533_s30, 0 }
  0x73   : > { %s2787_s21 = scalar_lea.vmem [#allocation8], %s2071_s17  ;;  %v437_v0 = vld [vmem:[%s2914_s1] sm:$0xff] (!%p2072_p1)  ;;  %v438_v1 = vld [vmem:[%s2914_s1 + $0x8] sm:$0xff] (!%p2072_p1) }
  0x74   : > { %436 = sbr.rel (%p2072_p1) target bundleno = 126 (0x7e), region = 60  ;;  %v441_v2 = vld [vmem:[%s2915_s2] sm:$0xff] (!%p2072_p1)  ;;  %439 = vst [vmem:[%s2920_s7] sm:$0xff] (!%p2072_p1), %v437_v0  ;;  %440 = vst [vmem:[%s2920_s7 + $0x8] sm:$0xff] (!%p2072_p1), %v438_v1 }
  0x75   : > { %443 = vst [vmem:[%s2921_s8] sm:$0xff] (!%p2072_p1), %v441_v2 }
  0x7c   : > { %v442_v3 = vld [vmem:[%s2915_s2 + $0x8] sm:$0xff] }
  0x7d   : > { %444 = vst [vmem:[%s2921_s8 + $0x8] sm:$0xff] %v442_v3 }
  0x7e PF: > { %v485_v4 = vld [vmem:[#allocation7] sm:$0xff]  ;;  %v486_v6 = vld [vmem:[#allocation7 + $0x8] sm:$0xff]  ;;  %v448_v57 = vld [vmem:[%s2920_s7 + $0x8] sm:$0xff]  ;;  %vm1577_vm0 = vcmask 523264   ;;  %s2250_s14 = sshll.u32 %s2533_s30, 8  ;;  %s1876_s13 = sshll.u32 %s2787_s21, 4  ;;  %s2863_s13 = int_to_ptr.vmem [resolvable:$true] %s1876_s13 }
  0x7f   : > { %v489_v5 = vld [vmem:[#allocation7 + $0x20] sm:$0xff]  ;;  %v490_v8 = vld [vmem:[#allocation7 + $0x28] sm:$0xff]  ;;  %v2817_v61 = vpack.c.bf16 %v448_v57, %v448_v57  ;;  %s2944_s12 = sld [smem:[#allocation14_spill]]  ;;  %s1850_s30 = scalar_lea.sflag [#allocation4], %s2772_s25 }
  0x80   : > { %v2074_v7 = vcombine.high %v485_v4, %v489_v5  ;;  %v2073_v9 = vcombine.low %v485_v4, %v489_v5  ;;  %v493_v10 = vld [vmem:[#allocation7 + $0x40] sm:$0xff]  ;;  %v2076_v12 = vcombine.high %v486_v6, %v490_v8  ;;  %v2075_v13 = vcombine.low %v486_v6, %v490_v8  ;;  %v494_v15 = vld [vmem:[#allocation7 + $0x48] sm:$0xff]  ;;  %s2455_s27 = scalar_lea.vmem %s2863_s13, 256  ;;  %s2549_s15 = smov [#allocation8]  }
  0x81   : > { %v497_v11 = vld [vmem:[#allocation7 + $0x60] sm:$0xff]  ;;  %v498_v16 = vld [vmem:[#allocation7 + $0x68] sm:$0xff]  ;;  %1285 = vmatprep.mubr.bf16.mxu0 %v2817_v61  ;;  %1326 = vmatprep.mubr.bf16.mxu1 %v2817_v61  ;;  %p2456_p2 = scmp.ne.s32.totalorder %s2863_s13, %s2455_s27  ;;  %s2459_s11 = sshll.u32 %s2549_s15, 4  ;;  %s2460_s11 = int_to_ptr.vmem [resolvable:$false] %s2459_s11 }
  0x82   : > { %v2082_v14 = vcombine.high %v493_v10, %v497_v11  ;;  %v501_v17 = vld [vmem:[#allocation7 + $0x80] sm:$0xff]  ;;  %1253 = vmatprep.subr.bf16.mxu0 %v2074_v7  ;;  %v2084_v18 = vcombine.high %v494_v15, %v498_v16  ;;  %v502_v20 = vld [vmem:[#allocation7 + $0x88] sm:$0xff]  ;;  %1294 = vmatprep.subr.bf16.mxu1 %v2076_v12  ;;  %v2081_v22 = vcombine.low %v493_v10, %v497_v11  ;;  %p2462_p13 = scmp.lt.s32.totalorder %s2863_s13, %s2460_s11 }
  0x83   : > { %v505_v19 = vld [vmem:[#allocation7 + $0xa0] sm:$0xff]  ;;  %v506_v21 = vld [vmem:[#allocation7 + $0xa8] sm:$0xff]  ;;  %1254 = vmatpush1.bf16.msra.mxu0 %v2073_v9  ;;  %1295 = vmatpush1.bf16.msra.mxu1 %v2075_v13  ;;  %v2083_v23 = vcombine.low %v494_v15, %v498_v16  ;;  %p2457_p4 = pnand %p2456_p2, %p2720_p8 }
  0x84   : > { %1255 = vmatprep.subr.bf16.mxu0 %v2082_v14  ;;  %v2090_v24 = vcombine.high %v501_v17, %v505_v19  ;;  %1296 = vmatprep.subr.bf16.mxu1 %v2084_v18  ;;  %v2092_v25 = vcombine.high %v502_v20, %v506_v21  ;;  %v509_v26 = vld [vmem:[#allocation7 + $0xc0] sm:$0xff]  ;;  %v510_v28 = vld [vmem:[#allocation7 + $0xc8] sm:$0xff]  ;;  %v2089_v30 = vcombine.low %v501_v17, %v505_v19 }
  0x85   : > { %v513_v27 = vld [vmem:[#allocation7 + $0xe0] sm:$0xff]  ;;  %v514_v29 = vld [vmem:[#allocation7 + $0xe8] sm:$0xff]  ;;  %v2091_v31 = vcombine.low %v502_v20, %v506_v21  ;;  %s2861_s17 = scalar_lea.hbm %s2944_s12, %s2250_s14  ;;  %p2458_p6 = pneg %p2457_p4 }
  0x86   : > { %v2098_v32 = vcombine.high %v509_v26, %v513_v27  ;;  %v2100_v33 = vcombine.high %v510_v28, %v514_v29  ;;  %v517_v34 = vld [vmem:[#allocation7 + $0x100] sm:$0xff]  ;;  %v518_v36 = vld [vmem:[#allocation7 + $0x108] sm:$0xff]  ;;  %v2097_v38 = vcombine.low %v509_v26, %v513_v27  ;;  %v2099_v39 = vcombine.low %v510_v28, %v514_v29  ;;  %s2461_s14 = scalar_lea.vmem %s2460_s11, 512 }
  0x87   : > { %1256 = vmatpush1.bf16.msra.mxu0 %v2081_v22  ;;  %1297 = vmatpush1.bf16.msra.mxu1 %v2083_v23  ;;  %v521_v35 = vld [vmem:[#allocation7 + $0x120] sm:$0xff]  ;;  %v522_v37 = vld [vmem:[#allocation7 + $0x128] sm:$0xff]  ;;  %p2463_p0 = scmp.lt.s32.totalorder %s2461_s14, %s2455_s27 }
  0x88   : > { %1257 = vmatprep.subr.bf16.mxu0 %v2090_v24  ;;  %1298 = vmatprep.subr.bf16.mxu1 %v2092_v25  ;;  %v2106_v40 = vcombine.high %v517_v34, %v521_v35  ;;  %v2108_v41 = vcombine.high %v518_v36, %v522_v37  ;;  %v525_v42 = vld [vmem:[#allocation7 + $0x140] sm:$0xff]  ;;  %v526_v44 = vld [vmem:[#allocation7 + $0x148] sm:$0xff]  ;;  %v2105_v46 = vcombine.low %v517_v34, %v521_v35 }
  0x89   : > { %v529_v43 = vld [vmem:[#allocation7 + $0x160] sm:$0xff]  ;;  %v530_v45 = vld [vmem:[#allocation7 + $0x168] sm:$0xff]  ;;  %v2107_v47 = vcombine.low %v518_v36, %v522_v37  ;;  %p2464_p5 = por %p2463_p0, %p2462_p13 }
  0x8a   : > { %v2114_v48 = vcombine.high %v525_v42, %v529_v43  ;;  %v2116_v49 = vcombine.high %v526_v44, %v530_v45  ;;  %v533_v50 = vld [vmem:[#allocation7 + $0x180] sm:$0xff]  ;;  %v534_v52 = vld [vmem:[#allocation7 + $0x188] sm:$0xff]  ;;  %v2113_v54 = vcombine.low %v525_v42, %v529_v43  ;;  %v2115_v55 = vcombine.low %v526_v44, %v530_v45 }
  0x8b   : > { %1258 = vmatpush1.bf16.msra.mxu0 %v2089_v30  ;;  %1299 = vmatpush1.bf16.msra.mxu1 %v2091_v31  ;;  %v537_v51 = vld [vmem:[#allocation7 + $0x1a0] sm:$0xff]  ;;  %v538_v53 = vld [vmem:[#allocation7 + $0x1a8] sm:$0xff]  ;;  %p2465_p9 = pnand %p2464_p5, %p2458_p6 }
  0x8c   : > { %1259 = vmatprep.subr.bf16.mxu0 %v2098_v32  ;;  %1300 = vmatprep.subr.bf16.mxu1 %v2100_v33  ;;  %v2122_v56 = vcombine.high %v533_v50, %v537_v51  ;;  %v2124_v58 = vcombine.high %v534_v52, %v538_v53  ;;  %v541_v59 = vld [vmem:[#allocation7 + $0x1c0] sm:$0xff]  ;;  %v542_v62 = vld [vmem:[#allocation7 + $0x1c8] sm:$0xff]  ;;  %v2121_v0 = vcombine.low %v533_v50, %v537_v51 }
  0x8d   : > { %v545_v60 = vld [vmem:[#allocation7 + $0x1e0] sm:$0xff]  ;;  %v546_v63 = vld [vmem:[#allocation7 + $0x1e8] sm:$0xff]  ;;  %v2123_v1 = vcombine.low %v534_v52, %v538_v53 }
  0x8e   : > { %v2130_v2 = vcombine.high %v541_v59, %v545_v60  ;;  %v2132_v3 = vcombine.high %v542_v62, %v546_v63  ;;  %v549_v4 = vld [vmem:[#allocation7 + $0x200] sm:$0xff]  ;;  %v550_v6 = vld [vmem:[#allocation7 + $0x208] sm:$0xff]  ;;  %v2129_v8 = vcombine.low %v541_v59, %v545_v60  ;;  %v2131_v9 = vcombine.low %v542_v62, %v546_v63 }
  0x8f   : > { %1260 = vmatpush1.bf16.msra.mxu0 %v2097_v38  ;;  %1301 = vmatpush1.bf16.msra.mxu1 %v2099_v39  ;;  %v553_v5 = vld [vmem:[#allocation7 + $0x220] sm:$0xff]  ;;  %v554_v7 = vld [vmem:[#allocation7 + $0x228] sm:$0xff] }
  0x90   : > { %1261 = vmatprep.subr.bf16.mxu0 %v2106_v40  ;;  %1302 = vmatprep.subr.bf16.mxu1 %v2108_v41  ;;  %v2138_v10 = vcombine.high %v549_v4, %v553_v5  ;;  %v2140_v11 = vcombine.high %v550_v6, %v554_v7  ;;  %v557_v12 = vld [vmem:[#allocation7 + $0x240] sm:$0xff]  ;;  %v558_v14 = vld [vmem:[#allocation7 + $0x248] sm:$0xff]  ;;  %v2137_v16 = vcombine.low %v549_v4, %v553_v5  ;;  %v487_v5 = vld [vmem:[#allocation7 + $0x10] sm:$0xff] }
  0x91   : > { %v561_v13 = vld [vmem:[#allocation7 + $0x260] sm:$0xff]  ;;  %v562_v15 = vld [vmem:[#allocation7 + $0x268] sm:$0xff]  ;;  %v2139_v17 = vcombine.low %v550_v6, %v554_v7  ;;  %v491_v6 = vld [vmem:[#allocation7 + $0x30] sm:$0xff] }
  0x92   : > { %v2146_v18 = vcombine.high %v557_v12, %v561_v13  ;;  %v2148_v19 = vcombine.high %v558_v14, %v562_v15  ;;  %v565_v20 = vld [vmem:[#allocation7 + $0x280] sm:$0xff]  ;;  %v566_v22 = vld [vmem:[#allocation7 + $0x288] sm:$0xff]  ;;  %v2145_v24 = vcombine.low %v557_v12, %v561_v13  ;;  %v2147_v25 = vcombine.low %v558_v14, %v562_v15  ;;  %v488_v7 = vld [vmem:[#allocation7 + $0x18] sm:$0xff] }
  0x93   : > { %1262 = vmatpush1.bf16.msra.mxu0 %v2105_v46  ;;  %1303 = vmatpush1.bf16.msra.mxu1 %v2107_v47  ;;  %v569_v21 = vld [vmem:[#allocation7 + $0x2a0] sm:$0xff]  ;;  %v570_v23 = vld [vmem:[#allocation7 + $0x2a8] sm:$0xff]  ;;  %v2078_v12 = vcombine.high %v487_v5, %v491_v6  ;;  %v495_v14 = vld [vmem:[#allocation7 + $0x50] sm:$0xff] }
  0x94   : > { %1263 = vmatprep.subr.bf16.mxu0 %v2114_v48  ;;  %1304 = vmatprep.subr.bf16.mxu1 %v2116_v49  ;;  %v2154_v26 = vcombine.high %v565_v20, %v569_v21  ;;  %v2156_v27 = vcombine.high %v566_v22, %v570_v23  ;;  %v573_v28 = vld [vmem:[#allocation7 + $0x2c0] sm:$0xff]  ;;  %v574_v30 = vld [vmem:[#allocation7 + $0x2c8] sm:$0xff]  ;;  %v2153_v32 = vcombine.low %v565_v20, %v569_v21  ;;  %v499_v15 = vld [vmem:[#allocation7 + $0x70] sm:$0xff] }
  0x95   : > { %v577_v29 = vld [vmem:[#allocation7 + $0x2e0] sm:$0xff]  ;;  %v578_v31 = vld [vmem:[#allocation7 + $0x2e8] sm:$0xff]  ;;  %v2155_v33 = vcombine.low %v566_v22, %v570_v23  ;;  %v2086_v21 = vcombine.high %v495_v14, %v499_v15  ;;  %v503_v23 = vld [vmem:[#allocation7 + $0x90] sm:$0xff] }
  0x96   : > { %v2162_v34 = vcombine.high %v573_v28, %v577_v29  ;;  %v2164_v35 = vcombine.high %v574_v30, %v578_v31  ;;  %v581_v36 = vld [vmem:[#allocation7 + $0x300] sm:$0xff]  ;;  %v582_v38 = vld [vmem:[#allocation7 + $0x308] sm:$0xff]  ;;  %v2161_v40 = vcombine.low %v573_v28, %v577_v29  ;;  %v2163_v41 = vcombine.low %v574_v30, %v578_v31  ;;  %v511_v31 = vld [vmem:[#allocation7 + $0xd0] sm:$0xff] }
  0x97   : > { %1264 = vmatpush1.bf16.msra.mxu0 %v2113_v54  ;;  %1305 = vmatpush1.bf16.msra.mxu1 %v2115_v55  ;;  %v585_v37 = vld [vmem:[#allocation7 + $0x320] sm:$0xff]  ;;  %v586_v39 = vld [vmem:[#allocation7 + $0x328] sm:$0xff] }
  0x98   : > { %1265 = vmatprep.subr.bf16.mxu0 %v2122_v56  ;;  %1306 = vmatprep.subr.bf16.mxu1 %v2124_v58  ;;  %v2170_v42 = vcombine.high %v581_v36, %v585_v37  ;;  %v2172_v43 = vcombine.high %v582_v38, %v586_v39  ;;  %v589_v44 = vld [vmem:[#allocation7 + $0x340] sm:$0xff]  ;;  %v590_v46 = vld [vmem:[#allocation7 + $0x348] sm:$0xff]  ;;  %v2169_v48 = vcombine.low %v581_v36, %v585_v37 }
  0x99   : > { %v593_v45 = vld [vmem:[#allocation7 + $0x360] sm:$0xff]  ;;  %v594_v47 = vld [vmem:[#allocation7 + $0x368] sm:$0xff]  ;;  %v2171_v49 = vcombine.low %v582_v38, %v586_v39  ;;  %v519_v39 = vld [vmem:[#allocation7 + $0x110] sm:$0xff] }
  0x9a   : > { %v2178_v50 = vcombine.high %v589_v44, %v593_v45  ;;  %v2180_v51 = vcombine.high %v590_v46, %v594_v47  ;;  %v597_v52 = vld [vmem:[#allocation7 + $0x380] sm:$0xff]  ;;  %v598_v54 = vld [vmem:[#allocation7 + $0x388] sm:$0xff]  ;;  %v2177_v56 = vcombine.low %v589_v44, %v593_v45  ;;  %v2179_v57 = vcombine.low %v590_v46, %v594_v47  ;;  %v527_v46 = vld [vmem:[#allocation7 + $0x150] sm:$0xff] }
  0x9b   : > { %1266 = vmatpush1.bf16.msra.mxu0 %v2121_v0  ;;  %1307 = vmatpush1.bf16.msra.mxu1 %v2123_v1  ;;  %v601_v53 = vld [vmem:[#allocation7 + $0x3a0] sm:$0xff]  ;;  %v602_v55 = vld [vmem:[#allocation7 + $0x3a8] sm:$0xff]  ;;  %v531_v47 = vld [vmem:[#allocation7 + $0x170] sm:$0xff] }
  0x9c   : > { %1267 = vmatprep.subr.bf16.mxu0 %v2130_v2  ;;  %1308 = vmatprep.subr.bf16.mxu1 %v2132_v3  ;;  %v2186_v58 = vcombine.high %v597_v52, %v601_v53  ;;  %v2188_v59 = vcombine.high %v598_v54, %v602_v55  ;;  %v605_v60 = vld [vmem:[#allocation7 + $0x3c0] sm:$0xff]  ;;  %v606_v63 = vld [vmem:[#allocation7 + $0x3c8] sm:$0xff]  ;;  %v2185_v1 = vcombine.low %v597_v52, %v601_v53 }
  0x9d   : > { %v609_v62 = vld [vmem:[#allocation7 + $0x3e0] sm:$0xff]  ;;  %v610_v0 = vld [vmem:[#allocation7 + $0x3e8] sm:$0xff]  ;;  %v2187_v2 = vcombine.low %v598_v54, %v602_v55  ;;  %v2118_v52 = vcombine.high %v527_v46, %v531_v47  ;;  %v535_v54 = vld [vmem:[#allocation7 + $0x190] sm:$0xff] }
  0x9e   : > { %v2194_v3 = vcombine.high %v605_v60, %v609_v62  ;;  %v2196_v4 = vcombine.high %v606_v63, %v610_v0  ;;  %v539_v55 = vld [vmem:[#allocation7 + $0x1b0] sm:$0xff] }
  0x9f   : > { %1268 = vmatpush1.bf16.msra.mxu0 %v2129_v8  ;;  %1309 = vmatpush1.bf16.msra.mxu1 %v2131_v9  ;;  %v492_v8 = vld [vmem:[#allocation7 + $0x38] sm:$0xff]  ;;  %v2193_v9 = vcombine.low %v605_v60, %v609_v62  ;;  %v2126_v60 = vcombine.high %v535_v54, %v539_v55 }
  0xa0   : > { %1269 = vmatprep.subr.bf16.mxu0 %v2138_v10  ;;  %1310 = vmatprep.subr.bf16.mxu1 %v2140_v11  ;;  %v447_v10 = vld [vmem:[%s2920_s7] sm:$0xff]  ;;  %v2195_v11 = vcombine.low %v606_v63, %v610_v0  ;;  %v2080_v13 = vcombine.high %v488_v7, %v492_v8  ;;  %v2079_v20 = vcombine.low %v488_v7, %v492_v8 }
  0xa1   : > { %v543_v63 = vld [vmem:[#allocation7 + $0x1d0] sm:$0xff] }
  0xa2   : > { %v547_v0 = vld [vmem:[#allocation7 + $0x1f0] sm:$0xff] }
  0xa3   : > { %1270 = vmatpush1.bf16.msra.mxu0 %v2137_v16  ;;  %1311 = vmatpush1.bf16.msra.mxu1 %v2139_v17  ;;  %v2824_v16 = vpack.c.bf16 %v447_v10, %v447_v10  ;;  %v496_v17 = vld [vmem:[#allocation7 + $0x58] sm:$0xff]  ;;  %v551_v7 = vld [vmem:[#allocation7 + $0x210] sm:$0xff] }
  0xa4   : > { %1271 = vmatprep.subr.bf16.mxu0 %v2146_v18  ;;  %1312 = vmatprep.subr.bf16.mxu1 %v2148_v19  ;;  %v500_v18 = vld [vmem:[#allocation7 + $0x78] sm:$0xff]  ;;  %v2077_v19 = vcombine.low %v487_v5, %v491_v6  ;;  %v2134_v5 = vcombine.high %v543_v63, %v547_v0  ;;  %v555_v8 = vld [vmem:[#allocation7 + $0x230] sm:$0xff] }
  0xa5   : > { %v2088_v22 = vcombine.high %v496_v17, %v500_v18  ;;  %v2087_v28 = vcombine.low %v496_v17, %v500_v18  ;;  %v556_v10 = vld [vmem:[#allocation7 + $0x238] sm:$0xff]  ;;  %v563_v17 = vld [vmem:[#allocation7 + $0x270] sm:$0xff] }
  0xa6   : > { %v560_v18 = vld [vmem:[#allocation7 + $0x258] sm:$0xff] }
  0xa7   : > { %1272 = vmatpush1.bf16.msra.mxu0 %v2145_v24  ;;  %1313 = vmatpush1.bf16.msra.mxu1 %v2147_v25  ;;  %v507_v24 = vld [vmem:[#allocation7 + $0xb0] sm:$0xff]  ;;  %v504_v25 = vld [vmem:[#allocation7 + $0x98] sm:$0xff] }
  0xa8   : > { %1273 = vmatprep.subr.bf16.mxu0 %v2154_v26  ;;  %1314 = vmatprep.subr.bf16.mxu1 %v2156_v27  ;;  %v508_v26 = vld [vmem:[#allocation7 + $0xb8] sm:$0xff]  ;;  %v2085_v27 = vcombine.low %v495_v14, %v499_v15  ;;  %v2094_v29 = vcombine.high %v503_v23, %v507_v24  ;;  %v559_v15 = vld [vmem:[#allocation7 + $0x250] sm:$0xff] }
  0xa9   : > { %v2096_v30 = vcombine.high %v504_v25, %v508_v26  ;;  %v2095_v36 = vcombine.low %v504_v25, %v508_v26  ;;  %v571_v25 = vld [vmem:[#allocation7 + $0x2b0] sm:$0xff]  ;;  %v568_v26 = vld [vmem:[#allocation7 + $0x298] sm:$0xff] }
  0xab   : > { %1274 = vmatpush1.bf16.msra.mxu0 %v2153_v32  ;;  %1315 = vmatpush1.bf16.msra.mxu1 %v2155_v33  ;;  %v515_v32 = vld [vmem:[#allocation7 + $0xf0] sm:$0xff]  ;;  %v512_v33 = vld [vmem:[#allocation7 + $0xd8] sm:$0xff] }
  0xac   : > { %1275 = vmatprep.subr.bf16.mxu0 %v2162_v34  ;;  %1316 = vmatprep.subr.bf16.mxu1 %v2164_v35  ;;  %v516_v34 = vld [vmem:[#allocation7 + $0xf8] sm:$0xff]  ;;  %v2093_v35 = vcombine.low %v503_v23, %v507_v24  ;;  %v2102_v37 = vcombine.high %v511_v31, %v515_v32  ;;  %v567_v24 = vld [vmem:[#allocation7 + $0x290] sm:$0xff] }
  0xad   : > { %v2104_v38 = vcombine.high %v512_v33, %v516_v34  ;;  %v2103_v44 = vcombine.low %v512_v33, %v516_v34  ;;  %v579_v33 = vld [vmem:[#allocation7 + $0x2f0] sm:$0xff]  ;;  %v576_v34 = vld [vmem:[#allocation7 + $0x2d8] sm:$0xff] }
  0xaf   : > { %1276 = vmatpush1.bf16.msra.mxu0 %v2161_v40  ;;  %1317 = vmatpush1.bf16.msra.mxu1 %v2163_v41  ;;  %v523_v40 = vld [vmem:[#allocation7 + $0x130] sm:$0xff]  ;;  %v520_v41 = vld [vmem:[#allocation7 + $0x118] sm:$0xff] }
  0xb0   : > { %1277 = vmatprep.subr.bf16.mxu0 %v2170_v42  ;;  %1318 = vmatprep.subr.bf16.mxu1 %v2172_v43  ;;  %v524_v42 = vld [vmem:[#allocation7 + $0x138] sm:$0xff]  ;;  %v2101_v43 = vcombine.low %v511_v31, %v515_v32  ;;  %v2110_v45 = vcombine.high %v519_v39, %v523_v40  ;;  %v575_v32 = vld [vmem:[#allocation7 + $0x2d0] sm:$0xff] }
  0xb3   : > { %1278 = vmatpush1.bf16.msra.mxu0 %v2169_v48  ;;  %1319 = vmatpush1.bf16.msra.mxu1 %v2171_v49  ;;  %v528_v48 = vld [vmem:[#allocation7 + $0x158] sm:$0xff] }
  0xb4   : > { %1279 = vmatprep.subr.bf16.mxu0 %v2178_v50  ;;  %1320 = vmatprep.subr.bf16.mxu1 %v2180_v51  ;;  %v532_v49 = vld [vmem:[#allocation7 + $0x178] sm:$0xff]  ;;  %v2109_v50 = vcombine.low %v519_v39, %v523_v40  ;;  %v2111_v51 = vcombine.low %v520_v41, %v524_v42  ;;  %v583_v40 = vld [vmem:[#allocation7 + $0x310] sm:$0xff] }
  0xb5   : > { %v2120_v53 = vcombine.high %v528_v48, %v532_v49 }
  0xb7   : > { %1280 = vmatpush1.bf16.msra.mxu0 %v2177_v56  ;;  %1321 = vmatpush1.bf16.msra.mxu1 %v2179_v57  ;;  %v536_v56 = vld [vmem:[#allocation7 + $0x198] sm:$0xff] }
  0xb8   : > { %1281 = vmatprep.subr.bf16.mxu0 %v2186_v58  ;;  %1322 = vmatprep.subr.bf16.mxu1 %v2188_v59  ;;  %v540_v57 = vld [vmem:[#allocation7 + $0x1b8] sm:$0xff]  ;;  %v2117_v58 = vcombine.low %v527_v46, %v531_v47  ;;  %v2119_v59 = vcombine.low %v528_v48, %v532_v49  ;;  %v591_v47 = vld [vmem:[#allocation7 + $0x350] sm:$0xff] }
  0xb9   : > { %v2128_v62 = vcombine.high %v536_v56, %v540_v57  ;;  %v595_v48 = vld [vmem:[#allocation7 + $0x370] sm:$0xff]  ;;  %v592_v49 = vld [vmem:[#allocation7 + $0x358] sm:$0xff] }
  0xbb   : > { %1282 = vmatpush1.bf16.msra.mxu0 %v2185_v1  ;;  %1323 = vmatpush1.bf16.msra.mxu1 %v2187_v2  ;;  %v544_v1 = vld [vmem:[#allocation7 + $0x1d8] sm:$0xff] }
  0xbc   : > { %1283 = vmatprep.subr.bf16.mxu0 %v2194_v3  ;;  %1324 = vmatprep.subr.bf16.mxu1 %v2196_v4  ;;  %v548_v2 = vld [vmem:[#allocation7 + $0x1f8] sm:$0xff]  ;;  %v2125_v3 = vcombine.low %v535_v54, %v539_v55  ;;  %v2127_v4 = vcombine.low %v536_v56, %v540_v57  ;;  %v599_v55 = vld [vmem:[#allocation7 + $0x390] sm:$0xff] }
  0xbd   : > { %v2136_v6 = vcombine.high %v544_v1, %v548_v2  ;;  %v603_v56 = vld [vmem:[#allocation7 + $0x3b0] sm:$0xff]  ;;  %v600_v57 = vld [vmem:[#allocation7 + $0x398] sm:$0xff] }
  0xbf   : > { %1284 = vmatpush1.bf16.msra.mxu0 %v2193_v9  ;;  %1325 = vmatpush1.bf16.msra.mxu1 %v2195_v11  ;;  %v552_v9 = vld [vmem:[#allocation7 + $0x218] sm:$0xff]  ;;  %v2133_v11 = vcombine.low %v543_v63, %v547_v0  ;;  %v607_v0 = vld [vmem:[#allocation7 + $0x3d0] sm:$0xff] }
  0xc0   : > { %1335 = vmatprep.subr.bf16.mxu0 %v2078_v12  ;;  %1376 = vmatprep.subr.bf16.mxu1 %v2080_v13  ;;  %v2135_v12 = vcombine.low %v544_v1, %v548_v2  ;;  %v2142_v13 = vcombine.high %v551_v7, %v555_v8  ;;  %v2144_v14 = vcombine.high %v552_v9, %v556_v10  ;;  %v611_v1 = vld [vmem:[#allocation7 + $0x3f0] sm:$0xff]  ;;  %v608_v2 = vld [vmem:[#allocation7 + $0x3d8] sm:$0xff] }
  0xc2   : > { %1286 = vmatmul.mubr.bf16.vlgmr.msra.gmra.mrb[0].mxu0 %v2824_v16  ;;  %1327 = vmatmul.mubr.bf16.vlgmr.msra.gmra.mrb[0].mxu1 %v2824_v16 }
  0xc3   : > { %1336 = vmatpush1.bf16.msra.mxu0 %v2077_v19  ;;  %1377 = vmatpush1.bf16.msra.mxu1 %v2079_v20  ;;  %v564_v19 = vld [vmem:[#allocation7 + $0x278] sm:$0xff]  ;;  %v2141_v20 = vcombine.low %v551_v7, %v555_v8  ;;  %v451_v8 = vld [vmem:[#allocation5] sm:$0xff] }
  0xc4   : > { %1337 = vmatprep.subr.bf16.mxu0 %v2086_v21  ;;  %1378 = vmatprep.subr.bf16.mxu1 %v2088_v22  ;;  %v2143_v21 = vcombine.low %v552_v9, %v556_v10  ;;  %v2150_v22 = vcombine.high %v559_v15, %v563_v17  ;;  %v2152_v23 = vcombine.high %v560_v18, %v564_v19  ;;  %v455_v9 = vld [vmem:[#allocation5 + $0x20] sm:$0xff]  ;;  %v452_v10 = vld [vmem:[#allocation5 + $0x8] sm:$0xff] }
  0xc5   : > { %1367 = vmatprep.mubr.bf16.mxu0 %v2817_v61  ;;  %1408 = vmatprep.mubr.bf16.mxu1 %v2817_v61  ;;  %v2112_v61 = vcombine.high %v520_v41, %v524_v42  ;;  %v587_v41 = vld [vmem:[#allocation7 + $0x330] sm:$0xff]  ;;  %v584_v42 = vld [vmem:[#allocation7 + $0x318] sm:$0xff] }
  0xc7   : > { %1338 = vmatpush1.bf16.msra.mxu0 %v2085_v27  ;;  %1379 = vmatpush1.bf16.msra.mxu1 %v2087_v28  ;;  %v572_v27 = vld [vmem:[#allocation7 + $0x2b8] sm:$0xff]  ;;  %v2149_v28 = vcombine.low %v559_v15, %v563_v17  ;;  %v459_v17 = vld [vmem:[#allocation5 + $0x40] sm:$0xff] }
  0xc8   : > { %1339 = vmatprep.subr.bf16.mxu0 %v2094_v29  ;;  %1380 = vmatprep.subr.bf16.mxu1 %v2096_v30  ;;  %v2151_v29 = vcombine.low %v560_v18, %v564_v19  ;;  %v2158_v30 = vcombine.high %v567_v24, %v571_v25  ;;  %v2160_v31 = vcombine.high %v568_v26, %v572_v27  ;;  %v463_v18 = vld [vmem:[#allocation5 + $0x60] sm:$0xff]  ;;  %v460_v19 = vld [vmem:[#allocation5 + $0x48] sm:$0xff] }
  0xcb   : > { %1340 = vmatpush1.bf16.msra.mxu0 %v2093_v35  ;;  %1381 = vmatpush1.bf16.msra.mxu1 %v2095_v36  ;;  %v580_v35 = vld [vmem:[#allocation7 + $0x2f8] sm:$0xff]  ;;  %v2157_v36 = vcombine.low %v567_v24, %v571_v25  ;;  %v467_v25 = vld [vmem:[#allocation5 + $0x80] sm:$0xff] }
  0xcc   : > { %1341 = vmatprep.subr.bf16.mxu0 %v2102_v37  ;;  %1382 = vmatprep.subr.bf16.mxu1 %v2104_v38  ;;  %v2159_v37 = vcombine.low %v568_v26, %v572_v27  ;;  %v2166_v38 = vcombine.high %v575_v32, %v579_v33  ;;  %v2168_v39 = vcombine.high %v576_v34, %v580_v35  ;;  %v471_v26 = vld [vmem:[#allocation5 + $0xa0] sm:$0xff]  ;;  %v468_v27 = vld [vmem:[#allocation5 + $0x88] sm:$0xff] }
  0xcf   : > { %1342 = vmatpush1.bf16.msra.mxu0 %v2101_v43  ;;  %1383 = vmatpush1.bf16.msra.mxu1 %v2103_v44  ;;  %v588_v43 = vld [vmem:[#allocation7 + $0x338] sm:$0xff]  ;;  %v2165_v44 = vcombine.low %v575_v32, %v579_v33  ;;  %v475_v33 = vld [vmem:[#allocation5 + $0xc0] sm:$0xff] }
  0xd0   : > { %1343 = vmatprep.subr.bf16.mxu0 %v2110_v45  ;;  %1384 = vmatprep.subr.bf16.mxu1 %v2112_v61  ;;  %v2167_v45 = vcombine.low %v576_v34, %v580_v35  ;;  %v2174_v61 = vcombine.high %v583_v40, %v587_v41  ;;  %v2176_v46 = vcombine.high %v584_v42, %v588_v43  ;;  %v479_v34 = vld [vmem:[#allocation5 + $0xe0] sm:$0xff]  ;;  %v2548_v35 = vmov 0  }
  0xd3   : > { %1344 = vmatpush1.bf16.msra.mxu0 %v2109_v50  ;;  %1385 = vmatpush1.bf16.msra.mxu1 %v2111_v51  ;;  %v596_v50 = vld [vmem:[#allocation7 + $0x378] sm:$0xff]  ;;  %v2173_v51 = vcombine.low %v583_v40, %v587_v41  ;;  %v453_v41 = vld [vmem:[#allocation5 + $0x10] sm:$0xff] }
  0xd4   : > { %1345 = vmatprep.subr.bf16.mxu0 %v2118_v52  ;;  %1386 = vmatprep.subr.bf16.mxu1 %v2120_v53  ;;  %v2175_v52 = vcombine.low %v584_v42, %v588_v43  ;;  %v2182_v53 = vcombine.high %v591_v47, %v595_v48  ;;  %v2184_v54 = vcombine.high %v592_v49, %v596_v50  ;;  %v457_v42 = vld [vmem:[#allocation5 + $0x30] sm:$0xff]  ;;  %v454_v43 = vld [vmem:[#allocation5 + $0x18] sm:$0xff] }
  0xd7   : > { %1346 = vmatpush1.bf16.msra.mxu0 %v2117_v58  ;;  %1387 = vmatpush1.bf16.msra.mxu1 %v2119_v59  ;;  %v604_v58 = vld [vmem:[#allocation7 + $0x3b8] sm:$0xff]  ;;  %v2181_v59 = vcombine.low %v591_v47, %v595_v48  ;;  %v2206_v47 = vcombine.high %v453_v41, %v457_v42 }
  0xd8   : > { %1347 = vmatprep.subr.bf16.mxu0 %v2126_v60  ;;  %1388 = vmatprep.subr.bf16.mxu1 %v2128_v62  ;;  %v2183_v60 = vcombine.low %v592_v49, %v596_v50  ;;  %v2190_v62 = vcombine.high %v599_v55, %v603_v56  ;;  %v2192_v63 = vcombine.high %v600_v57, %v604_v58  ;;  %v461_v49 = vld [vmem:[#allocation5 + $0x50] sm:$0xff] }
  0xd9   : > { %v465_v50 = vld [vmem:[#allocation5 + $0x70] sm:$0xff] }
  0xdb   : > { %1348 = vmatpush1.bf16.msra.mxu0 %v2125_v3  ;;  %1389 = vmatpush1.bf16.msra.mxu1 %v2127_v4  ;;  %v612_v3 = vld [vmem:[#allocation7 + $0x3f8] sm:$0xff]  ;;  %v2189_v4 = vcombine.low %v599_v55, %v603_v56  ;;  %v2214_v56 = vcombine.high %v461_v49, %v465_v50 }
  0xdc   : > { %1349 = vmatprep.subr.bf16.mxu0 %v2134_v5  ;;  %1390 = vmatprep.subr.bf16.mxu1 %v2136_v6  ;;  %v2191_v5 = vcombine.low %v600_v57, %v604_v58  ;;  %v2198_v6 = vcombine.high %v607_v0, %v611_v1  ;;  %v2200_v7 = vcombine.high %v608_v2, %v612_v3  ;;  %v469_v58 = vld [vmem:[#allocation5 + $0x90] sm:$0xff] }
  0xdf   : > { %1350 = vmatpush1.bf16.msra.mxu0 %v2133_v11  ;;  %1391 = vmatpush1.bf16.msra.mxu1 %v2135_v12  ;;  %v456_v11 = vld [vmem:[#allocation5 + $0x28] sm:$0xff]  ;;  %v2197_v12 = vcombine.low %v607_v0, %v611_v1 }
  0xe0   : > { %1351 = vmatprep.subr.bf16.mxu0 %v2142_v13  ;;  %1392 = vmatprep.subr.bf16.mxu1 %v2144_v14  ;;  %v2199_v13 = vcombine.low %v608_v2, %v612_v3  ;;  %v2202_v14 = vcombine.high %v451_v8, %v455_v9  ;;  %v2204_v15 = vcombine.high %v452_v10, %v456_v11  ;;  %v477_v3 = vld [vmem:[#allocation5 + $0xd0] sm:$0xff] }
  0xe3   : > { %1352 = vmatpush1.bf16.msra.mxu0 %v2141_v20  ;;  %1393 = vmatpush1.bf16.msra.mxu1 %v2143_v21  ;;  %v464_v20 = vld [vmem:[#allocation5 + $0x68] sm:$0xff]  ;;  %v2201_v21 = vcombine.low %v451_v8, %v455_v9 }
  0xe4   : > { %1353 = vmatprep.subr.bf16.mxu0 %v2150_v22  ;;  %1394 = vmatprep.subr.bf16.mxu1 %v2152_v23  ;;  %v2203_v22 = vcombine.low %v452_v10, %v456_v11  ;;  %v2210_v23 = vcombine.high %v459_v17, %v463_v18  ;;  %v2212_v24 = vcombine.high %v460_v19, %v464_v20 }
  0xe7   : > { %1354 = vmatpush1.bf16.msra.mxu0 %v2149_v28  ;;  %1395 = vmatpush1.bf16.msra.mxu1 %v2151_v29  ;;  %v472_v28 = vld [vmem:[#allocation5 + $0xa8] sm:$0xff]  ;;  %v2209_v29 = vcombine.low %v459_v17, %v463_v18 }
  0xe8   : > { %1355 = vmatprep.subr.bf16.mxu0 %v2158_v30  ;;  %1396 = vmatprep.subr.bf16.mxu1 %v2160_v31  ;;  %v2211_v30 = vcombine.low %v460_v19, %v464_v20  ;;  %v2218_v31 = vcombine.high %v467_v25, %v471_v26  ;;  %v2220_v32 = vcombine.high %v468_v27, %v472_v28 }
  0xeb   : > { %1356 = vmatpush1.bf16.msra.mxu0 %v2157_v36  ;;  %1397 = vmatpush1.bf16.msra.mxu1 %v2159_v37  ;;  %v476_v36 = vld [vmem:[#allocation5 + $0xc8] sm:$0xff] }
  0xec   : > { %1357 = vmatprep.subr.bf16.mxu0 %v2166_v38  ;;  %1398 = vmatprep.subr.bf16.mxu1 %v2168_v39  ;;  %v480_v37 = vld [vmem:[#allocation5 + $0xe8] sm:$0xff]  ;;  %v2217_v38 = vcombine.low %v467_v25, %v471_v26  ;;  %v2226_v39 = vcombine.high %v475_v33, %v479_v34 }
  0xed   : > { %v2228_v40 = vcombine.high %v476_v36, %v480_v37 }
  0xef   : > { %1358 = vmatpush1.bf16.msra.mxu0 %v2165_v44  ;;  %1399 = vmatpush1.bf16.msra.mxu1 %v2167_v45  ;;  %v458_v44 = vld [vmem:[#allocation5 + $0x38] sm:$0xff]  ;;  %v2225_v45 = vcombine.low %v475_v33, %v479_v34  ;;  %v1745_v33 = vld [vmem:[%s2918_s5] sm:$0xff] }
  0xf0   : > { %1359 = vmatprep.subr.bf16.mxu0 %v2174_v61  ;;  %1400 = vmatprep.subr.bf16.mxu1 %v2176_v46  ;;  %v445_v61 = vld [vmem:[%s2776_s18] sm:$0xff]  ;;  %v2227_v46 = vcombine.low %v476_v36, %v480_v37  ;;  %v2208_v48 = vcombine.high %v454_v43, %v458_v44  ;;  %v2207_v55 = vcombine.low %v454_v43, %v458_v44 }
  0xf3   : > { %1360 = vmatpush1.bf16.msra.mxu0 %v2173_v51  ;;  %1401 = vmatpush1.bf16.msra.mxu1 %v2175_v52  ;;  %v446_v51 = vpack.c.bf16 %v445_v61, %v445_v61  ;;  %v462_v52 = vld [vmem:[#allocation5 + $0x58] sm:$0xff] }
  0xf4   : > { %1361 = vmatprep.subr.bf16.mxu0 %v2182_v53  ;;  %1402 = vmatprep.subr.bf16.mxu1 %v2184_v54  ;;  %v466_v53 = vld [vmem:[#allocation5 + $0x78] sm:$0xff]  ;;  %v2205_v54 = vcombine.low %v453_v41, %v457_v42 }
  0xf5   : > { %v2216_v57 = vcombine.high %v462_v52, %v466_v53  ;;  %v2215_v0 = vcombine.low %v462_v52, %v466_v53 }
  0xf7   : > { %1362 = vmatpush1.bf16.msra.mxu0 %v2181_v59  ;;  %1403 = vmatpush1.bf16.msra.mxu1 %v2183_v60  ;;  %v473_v59 = vld [vmem:[#allocation5 + $0xb0] sm:$0xff]  ;;  %v470_v60 = vld [vmem:[#allocation5 + $0x98] sm:$0xff] }
  0xf8   : > { %1363 = vmatprep.subr.bf16.mxu0 %v2190_v62  ;;  %1404 = vmatprep.subr.bf16.mxu1 %v2192_v63  ;;  %v474_v62 = vld [vmem:[#allocation5 + $0xb8] sm:$0xff]  ;;  %v2213_v63 = vcombine.low %v461_v49, %v465_v50  ;;  %v2222_v1 = vcombine.high %v469_v58, %v473_v59 }
  0xf9   : > { %v2224_v2 = vcombine.high %v470_v60, %v474_v62  ;;  %v2223_v8 = vcombine.low %v470_v60, %v474_v62 }
  0xfb   : > { %1364 = vmatpush1.bf16.msra.mxu0 %v2189_v4  ;;  %1405 = vmatpush1.bf16.msra.mxu1 %v2191_v5  ;;  %v481_v4 = vld [vmem:[#allocation5 + $0xf0] sm:$0xff]  ;;  %v478_v5 = vld [vmem:[#allocation5 + $0xd8] sm:$0xff] }
  0xfc   : > { %1365 = vmatprep.subr.bf16.mxu0 %v2198_v6  ;;  %1406 = vmatprep.subr.bf16.mxu1 %v2200_v7  ;;  %v482_v6 = vld [vmem:[#allocation5 + $0xf8] sm:$0xff]  ;;  %v2221_v7 = vcombine.low %v469_v58, %v473_v59  ;;  %v2230_v9 = vcombine.high %v477_v3, %v481_v4  ;;  %v2229_v11 = vcombine.low %v477_v3, %v481_v4 }
  0xfd   : > { %v2232_v10 = vcombine.high %v478_v5, %v482_v6 }
  0xff   : > { %1366 = vmatpush1.bf16.msra.mxu0 %v2197_v12  ;;  %1407 = vmatpush1.bf16.msra.mxu1 %v2199_v13  ;;  %v2231_v12 = vcombine.low %v478_v5, %v482_v6 }
 0x100   : > { %1581 = vmatprep.subr.bf16.mxu0 %v2202_v14  ;;  %1622 = vmatprep.subr.bf16.mxu1 %v2204_v15 }
 0x102   : > { %1368 = vmatmul.mubr.bf16.vlgmr.msra.gmra.mrb[4].mxu0 %v2824_v16  ;;  %1409 = vmatmul.mubr.bf16.vlgmr.msra.gmra.mrb[4].mxu1 %v2824_v16  ;;  %v2219_v16 = vcombine.low %v468_v27, %v472_v28 }
 0x103   : > { %1582 = vmatpush1.bf16.msra.mxu0 %v2201_v21  ;;  %1623 = vmatpush1.bf16.msra.mxu1 %v2203_v22 }
 0x104   : > { %1583 = vmatprep.subr.bf16.mxu0 %v2210_v23  ;;  %1624 = vmatprep.subr.bf16.mxu1 %v2212_v24 }
 0x105   : > { %1613 = vmatprep.mubr.bf16.mxu0 %v2548_v35  ;;  %1654 = vmatprep.mubr.bf16.mxu1 %v2548_v35 }
 0x107   : > { %1584 = vmatpush1.bf16.msra.mxu0 %v2209_v29  ;;  %1625 = vmatpush1.bf16.msra.mxu1 %v2211_v30  ;;  %v1747_v29 = vlaneseq }
 0x108   : > { %1585 = vmatprep.subr.bf16.mxu0 %v2218_v31  ;;  %1626 = vmatprep.subr.bf16.mxu1 %v2220_v32 }
 0x109   : > { %v1748_v31 = vshrl.u32 %v1747_v29, 7 }
 0x10b   : > { %1586 = vmatpush1.bf16.msra.mxu0 %v2217_v38  ;;  %1627 = vmatpush1.bf16.msra.mxu1 %v2219_v16  ;;  %v1749_v32 = vsub.s32 0, %v1748_v31  ;;  %v1757_v34 = vsub.s32 2, %v1748_v31  ;;  %v1761_v36 = vsub.s32 3, %v1748_v31  ;;  %v1765_v59 = vsub.s32 4, %v1748_v31 }
 0x10c   : > { %1587 = vmatprep.subr.bf16.mxu0 %v2226_v39  ;;  %1628 = vmatprep.subr.bf16.mxu1 %v2228_v40  ;;  %v1773_v60 = vsub.s32 6, %v1748_v31  ;;  %v1777_v62 = vsub.s32 7, %v1748_v31 }
 0x10d   : > { %v1750_v37 = vrot.slane %v1745_v33, %v1749_v32  ;;  %v1758_v16 = vrot.slane %v1745_v33, %v1757_v34  ;;  %v1762_v43 = vrot.slane %v1745_v33, %v1761_v36  ;;  %v449_v32 = vld [vmem:[%s2921_s8] sm:$0xff] }
 0x10f   : > { %1588 = vmatpush1.bf16.msra.mxu0 %v2225_v45  ;;  %1629 = vmatpush1.bf16.msra.mxu1 %v2227_v46 }
 0x110   : > { %1663 = vmatprep.subr.bf16.mxu0 %v2206_v47  ;;  %1704 = vmatprep.subr.bf16.mxu1 %v2208_v48 }
 0x112   : > { %2233 = vmatmul.mubr.msk.bf16.vlgmr.msra.gmra.mrb[8].mxu0 %vm1577_vm0, %v446_v51  ;;  %2234 = vmatmul.mubr.msk.bf16.vlgmr.msra.gmra.mrb[8].mxu1 %vm1577_vm0, %v446_v51 }
 0x113   : > { %1664 = vmatpush1.bf16.msra.mxu0 %v2205_v54  ;;  %1705 = vmatpush1.bf16.msra.mxu1 %v2207_v55 }
 0x114   : > { %1665 = vmatprep.subr.bf16.mxu0 %v2214_v56  ;;  %1706 = vmatprep.subr.bf16.mxu1 %v2216_v57 }
 0x115   : > { %1695 = vmatprep.mubr.bf16.mxu0 %v2548_v35  ;;  %1736 = vmatprep.mubr.bf16.mxu1 %v2548_v35  ;;  %v1753_v35 = vsub.s32 1, %v1748_v31 }
 0x117   : > { %1666 = vmatpush1.bf16.msra.mxu0 %v2213_v63  ;;  %1707 = vmatpush1.bf16.msra.mxu1 %v2215_v0  ;;  %v1754_v39 = vrot.slane %v1745_v33, %v1753_v35  ;;  %v1769_v63 = vsub.s32 5, %v1748_v31  ;;  %v450_v35 = vld [vmem:[%s2921_s8 + $0x8] sm:$0xff] }
 0x118   : > { %1667 = vmatprep.subr.bf16.mxu0 %v2222_v1  ;;  %1708 = vmatprep.subr.bf16.mxu1 %v2224_v2  ;;  %v1766_v1 = vrot.slane %v1745_v33, %v1765_v59  ;;  %v1774_v2 = vrot.slane %v1745_v33, %v1773_v60 }
 0x11b   : > { %1668 = vmatpush1.bf16.msra.mxu0 %v2221_v7  ;;  %1709 = vmatpush1.bf16.msra.mxu1 %v2223_v8  ;;  %v1778_v7 = vrot.slane %v1745_v33, %v1777_v62 }
 0x11c   : > { %1669 = vmatprep.subr.bf16.mxu0 %v2230_v9  ;;  %1710 = vmatprep.subr.bf16.mxu1 %v2232_v10 }
 0x11f   : > { %1670 = vmatpush1.bf16.msra.mxu0 %v2229_v11  ;;  %1711 = vmatpush1.bf16.msra.mxu1 %v2231_v12  ;;  %v1770_v12 = vrot.slane %v1745_v33, %v1769_v63 }
 0x122   : > { %2235 = vmatmul.mubr.msk.bf16.vlgmr.msra.gmra.mrb[12].mxu0 %vm1577_vm0, %v446_v51  ;;  %2236 = vmatmul.mubr.msk.bf16.vlgmr.msra.gmra.mrb[12].mxu1 %vm1577_vm0, %v446_v51 }
 0x195   : > { %v1287_v13 = vpop.f32.mrb[0].mxu0  ;;  %v1328_v14 = vpop.f32.mrb[0].mxu1 }
 0x196   : > { %v1289_v15 = vpop.f32.mrb[1].mxu0  ;;  %v1330_v17 = vpop.f32.mrb[1].mxu1 }
 0x197   : > { %v1291_v18 = vpop.f32.mrb[2].mxu0  ;;  %v1332_v19 = vpop.f32.mrb[2].mxu1 }
 0x198   : > { %v1292_v20 = vpop.f32.mrb[3].mxu0  ;;  %v1333_v21 = vpop.f32.mrb[3].mxu1 }
 0x1d5   : > { %v1369_v22 = vpop.f32.mrb[4].mxu0  ;;  %v1410_v23 = vpop.f32.mrb[4].mxu1 }
 0x1d6   : > { %v1371_v24 = vpop.f32.mrb[5].mxu0  ;;  %v1412_v25 = vpop.f32.mrb[5].mxu1 }
 0x1d7   : > { %v1373_v26 = vpop.f32.mrb[6].mxu0  ;;  %v1414_v27 = vpop.f32.mrb[6].mxu1 }
 0x1d8   : > { %v1374_v28 = vpop.f32.mrb[7].mxu0  ;;  %v1415_v30 = vpop.f32.mrb[7].mxu1 }
 0x1e5   : > { %v1615_v38 = vpop.f32.mrb[8].mxu0  ;;  %v1656_v41 = vpop.f32.mrb[8].mxu1 }
 0x1e6   : > { %v1616_v40 = vadd.f32 %v1615_v38, %v1287_v13  ;;  %v1617_v42 = vpop.f32.mrb[9].mxu0  ;;  %v1657_v44 = vadd.f32 %v1656_v41, %v1328_v14  ;;  %v1658_v61 = vpop.f32.mrb[9].mxu1 }
 0x1e7   : > { %v1618_v45 = vadd.f32 %v1617_v42, %v1289_v15  ;;  %v1619_v46 = vpop.f32.mrb[10].mxu0  ;;  %v1659_v48 = vadd.f32 %v1658_v61, %v1330_v17  ;;  %v1660_v49 = vpop.f32.mrb[10].mxu1 }
 0x1e8   : > { %v1787_v47 = vadd.f32 %v1750_v37, %v1616_v40  ;;  %v1620_v50 = vpop.f32.mrb[11].mxu0  ;;  %v1789_v51 = vadd.f32 %v1758_v16, %v1657_v44  ;;  %v1661_v53 = vpop.f32.mrb[11].mxu1 }
 0x1e9   : > { %v1788_v52 = vadd.f32 %v1754_v39, %v1618_v45  ;;  %v1790_v55 = vadd.f32 %v1762_v43, %v1659_v48 }
 0x1ea   : > { %v2237_v54 = vmul.f32 -1.442695, %v1787_v47  ;;  %v2239_v56 = vmul.f32 -1.442695, %v1789_v51 }
 0x1eb   : > { %v2238_v57 = vmul.f32 -1.442695, %v1788_v52  ;;  %v2240_v58 = vmul.f32 -1.442695, %v1790_v55 }
 0x1ec   : > { %2337 = vpow2.f32 %v2237_v54 }
 0x1ed   : > { %2339 = vpow2.f32 %v2239_v56 }
 0x1ee   : > { %2341 = vpow2.f32 %v2238_v57 }
 0x1ef   : > { %2343 = vpow2.f32 %v2240_v58 }
 0x1f5   : > { %v1697_v0 = vpop.f32.mrb[12].mxu0  ;;  %v1738_v5 = vpop.f32.mrb[12].mxu1 }
 0x1f6   : > { %v2338_v3 = vpop.eup %2337  ;;  %v1698_v4 = vadd.f32 %v1697_v0, %v1369_v22  ;;  %v1699_v6 = vpop.f32.mrb[13].mxu0  ;;  %v1739_v10 = vadd.f32 %v1738_v5, %v1410_v23 }
 0x1f7   : > { %v2340_v8 = vpop.eup %2339  ;;  %v1801_v9 = vadd.f32 1.0, %v2338_v3  ;;  %v1700_v11 = vadd.f32 %v1699_v6, %v1371_v24  ;;  %v1740_v13 = vpop.f32.mrb[13].mxu1 }
 0x1f8   : > { %v1701_v14 = vpop.f32.mrb[14].mxu0  ;;  %v2342_v15 = vpop.eup %2341  ;;  %v1813_v17 = vadd.f32 1.0, %v2340_v8  ;;  %v1741_v18 = vadd.f32 %v1740_v13, %v1412_v25  ;;  %v1791_v27 = vadd.f32 %v1766_v1, %v1698_v4  ;;  %v1793_v22 = vadd.f32 %v1774_v2, %v1739_v10 }
 0x1f9   : > { %v1742_v19 = vpop.f32.mrb[14].mxu1  ;;  %v1702_v20 = vpop.f32.mrb[15].mxu0  ;;  %2345 = vrcp.f32 %v1801_v9  ;;  %v1802_v26 = vadd.f32 1.0, %v2342_v15  ;;  %v1792_v24 = vadd.f32 %v1770_v12, %v1700_v11 }
 0x1fa   : > { %v2344_v21 = vpop.eup %2343  ;;  %v1743_v28 = vpop.f32.mrb[15].mxu1  ;;  %2347 = vrcp.f32 %v1813_v17  ;;  %v1794_v30 = vadd.f32 %v1778_v7, %v1741_v18  ;;  %v2241_v23 = vmul.f32 -1.442695, %v1793_v22 }
 0x1fb   : > { %v1814_v29 = vadd.f32 1.0, %v2344_v21  ;;  %2349 = vrcp.f32 %v1802_v26 }
 0x1fc   : > { %v2242_v31 = vmul.f32 -1.442695, %v1794_v30 }
 0x1fd   : > { %2351 = vrcp.f32 %v1814_v29 }
 0x1fe   : > { %2353 = vtanh.f32 %v1791_v27 }
 0x1ff   : > { %2355 = vpow2.f32 %v2241_v23 }
 0x200   : > { %2357 = vtanh.f32 %v1792_v24 }
 0x201   : > { %2359 = vpow2.f32 %v2242_v31 }
 0x203   : > { %v2346_v25 = vpop.eup %2345 }
 0x204   : > { %v2348_v33 = vpop.eup %2347 }
 0x205   : > { %v2350_v34 = vpop.eup %2349  ;;  %v1833_v37 = vmul.f32 %v2348_v33, %v449_v32 }
 0x207   : > { %v2352_v36 = vpop.eup %2351 }
 0x208   : > { %v2354_v38 = vpop.eup %2353  ;;  %v1834_v39 = vmul.f32 %v2352_v36, %v450_v35 }
 0x209   : > { %v2356_v16 = vpop.eup %2355  ;;  %v1835_v40 = vmul.f32 %v2354_v38, %v2346_v25 }
 0x20a   : > { %v2358_v41 = vpop.eup %2357  ;;  %v1827_v42 = vadd.f32 1.0, %v2356_v16 }
 0x20b   : > { %v2360_v43 = vpop.eup %2359  ;;  %v1837_v44 = vadd.f32 %v1835_v40, %v1833_v37  ;;  %v1836_v45 = vmul.f32 %v2358_v41, %v2350_v34 }
 0x20c   : > { %2361 = vrcp.f32 %v1827_v42  ;;  %v1828_v61 = vadd.f32 1.0, %v2360_v43 }
 0x20d   : > { %2363 = vtanh.f32 %v1837_v44  ;;  %1845 = vst [vmem:[%s2921_s8] sm:$0xff] %v1837_v44  ;;  %v1838_v46 = vadd.f32 %v1836_v45, %v1834_v39 }
 0x20e   : > { %2365 = vrcp.f32 %v1828_v61 }
 0x20f   : > { %2367 = vtanh.f32 %v1838_v46  ;;  %1846 = vst [vmem:[%s2921_s8 + $0x8] sm:$0xff] %v1838_v46 }
 0x216   : > { %v2362_v47 = vpop.eup %2361 }
 0x217   : > { %v2364_v48 = vpop.eup %2363 }
 0x218   : > { %v2366_v49 = vpop.eup %2365  ;;  %v1841_v50 = vmul.f32 %v2364_v48, %v2362_v47 }
 0x219   : > { %v2368_v51 = vpop.eup %2367 }
 0x21a   : > { %v1842_v52 = vmul.f32 %v2368_v51, %v2366_v49  ;;  %1843 = vst [vmem:[%s2920_s7] sm:$0xff] %v1841_v50  ;;  %1847 = vst [vmem:[%s2787_s21] sm:$0xff] %v1841_v50 }
 0x21c   : > { %1844 = vst [vmem:[%s2920_s7 + $0x8] sm:$0xff] %v1842_v52  ;;  %1848 = vst [vmem:[%s2787_s21 + $0x8] sm:$0xff] %v1842_v52 }
 0x21d   : > { %2468 = shalt.err (!%p2465_p9)
}
 0x21e   : > { %s2469_s25 = scalar_lea.hbm %s2861_s17, 256  ;;  %s2473_s18 = scalar_lea.hbm %s2944_s12, 2048 }
 0x21f   : > { %p2470_p12 = scmp.ne.s32.totalorder %s2861_s17, %s2469_s25  ;;  %p2474_p3 = scmp.lt.u32.totalorder %s2861_s17, %s2944_s12 }
 0x220   : > { %p2475_p10 = scmp.lt.u32.totalorder %s2473_s18, %s2469_s25  ;;  %p2477_p2 = scmp.lt.u32.totalorder %s2469_s25, %s2861_s17 }
 0x221   : > { %p2471_p11 = pnand %p2470_p12, %p2720_p8 }
 0x222   : > { %p2476_p1 = por %p2475_p10, %p2474_p3 }
 0x223   : > { %p2472_p7 = pneg %p2471_p11 }
 0x224   : > { %p2478_p4 = por %p2477_p2, %p2476_p1 }
 0x226   : > { %p2479_p6 = pnand %p2478_p4, %p2472_p7 }
 0x228   : > { %2482 = shalt.err (!%p2479_p6)
}
 0x229   : > { %2261 = dma.vmem_to_hbm [thread:$0]  (%p2720_p8), %s2863_s13, 256, %s2861_s17, %s1850_s30  }
 0x22a PF: > { %s2945_s19 = sld [smem:[#allocation12_spill]]  ;;  %s2946_s6 = sld [smem:[#allocation13_spill]] }
 0x22b   : > { %p2283_p13 = scmp.ge.s32.totalorder %s2541_s10, 2 }
 0x230   : > { %s1910_s27 = sand.u32 1, %s2945_s19   ;;  %p2947_p0 = scmp.ne.s32.totalorder %s2946_s6, 0 }
 0x231   : > { %s1911_s15 = scalar_lea.sflag [#allocation4], %s1910_s27 }
 0x232   : > { %p2275_p5 = pnand %p2283_p13, %p2947_p0 }
 0x234   : > { %2516 = dma.done.wait (!%p2275_p5), %s1911_s15, 256  }
 0x235   : > { %2518 = vsyncadd (!%p2275_p5), %s1911_s15, 4294967040  ;;  %s26_s10 = sadd.s32 1, %s2541_s10   ;;  %s2948_s27 = smov %s2525_s28 }
 0x236   : > { %p23_p9 = scmp.ge.s32.totalorder %s26_s10, 10   ;;  %s2949_s28 = smov %s2529_s29 }
 0x237   : > { %s2950_s29 = smov %s2729_s24  ;;  %s2951_s30 = smov %s2537_s9 }
 0x238   : > { %s2952_s9 = smov %s2954_s16  ;;  %25 = sbr.rel (!%p23_p9) target bundleno = 9 (0x9), region = 131 }
 0x23f   :  { %1916 = vsyncpa [#allocation3], 1 }
 0x240   :  { %1918 = vsyncpa [#allocation3 + $0x1], 1 }
 0x241   :  { %1919 = vsyncpa [#allocation6], 1 }
 0x242   :  { %1920 = vsyncpa [#allocation4], 1 }
 0x243   :  { %1922 = vsyncpa [#allocation4 + $0x1], 1 }

</bundles_post_ra>
